<compile_context>
chip_gen: v6e
topology: v6e:2x2x1
jax: 0.10.0
libtpu: 0.0.40
codegen_flags: <defaults>
</compile_context>

<pallas_src>
import jax
import jax.numpy as jnp
from jax.experimental import pallas as pl
from jax.experimental.pallas import tpu as pltpu


def _round_up(x, m):
    return ((x + m - 1) // m) * m


def ffn_kernel(x_ref, w1_ref, b1_ref, w2_ref, b2_ref, o_ref, acc_ref):
    h_idx = pl.program_id(1)

    @pl.when(h_idx == 0)
    def _init():
        # Fold the output bias into the accumulator init (no extra per-step add).
        acc_ref[...] = jnp.broadcast_to(
            b2_ref[...].astype(jnp.float32), acc_ref.shape
        )

    # First linear (E -> th chunk of H) on the MXU, f32 accumulate.
    h = jnp.dot(x_ref[...], w1_ref[...], preferred_element_type=jnp.float32)
    # Bias + ReLU in f32 on the VPU (elementwise, so exact per hidden chunk).
    h = jnp.maximum(h + b1_ref[...], 0.0)

    # Second linear (th chunk -> E), accumulated across the hidden grid axis.
    acc_ref[...] += jnp.dot(
        h.astype(w2_ref.dtype), w2_ref[...], preferred_element_type=jnp.float32
    )

    @pl.when(h_idx == pl.num_programs(1) - 1)
    def _finalize():
        # Dropout: identity (inference / eval mode).
        o_ref[...] = acc_ref[...].astype(o_ref.dtype)


def feed_forward(x, w1, b1, w2, b2, *, tm=None, mxu_dtype=jnp.bfloat16):
    """x: (B, S, E). w1: (E, H), b1: (H,), w2: (H, E), b2: (E,). Returns (B, S, E)."""
    B, S, E = x.shape
    H = w1.shape[1]
    M = B * S

    out_dtype = x.dtype
    out_bytes = jnp.dtype(out_dtype).itemsize
    cbytes = jnp.dtype(mxu_dtype).itemsize

    # Cast operands to the MXU dtype outside the kernel (halves weight HBM traffic
    # for bf16 and removes per-step in-kernel casts).  Biases stay f32.
    x2d = x.reshape(M, E).astype(mxu_dtype)
    w1c = w1.astype(mxu_dtype)
    w2c = w2.astype(mxu_dtype)
    b1_2d = b1.reshape(1, H).astype(jnp.float32)
    b2_2d = b2.reshape(1, E).astype(jnp.float32)

    # ---- Generation-aware VMEM budget.
    try:
        vmem_cap = int(pltpu.get_tpu_info().vmem_capacity_bytes)
        if vmem_cap <= 0:
            raise ValueError("bad vmem capacity")
    except Exception:  # conservative (v7x-sized) fallback
        vmem_cap = 64 * 1024 * 1024
    vmem_budget = int(vmem_cap * 0.85)  # headroom for Mosaic internal scratch

    def vmem_needed(tm_, th_):
        acc = tm_ * E * 4                        # f32 accumulator scratch
        xbuf = 2 * tm_ * E * cbytes              # x block (double buffered)
        obuf = 2 * tm_ * E * out_bytes           # output block (double buffered)
        wbuf = 2 * (E * th_ + th_ * E) * cbytes  # W1 / W2 chunks (double buffered)
        bbuf = 2 * (th_ + E) * 4                 # f32 biases
        return acc + xbuf + obuf + wbuf + bbuf

    # ---- Row tile: multiple of 8; cap so there are >= 2 row tiles (v7x megacore).
    M8 = _round_up(M, 8)
    max_tm = M8
    if M8 >= 16:
        max_tm = min(max_tm, _round_up((M8 + 1) // 2, 8))
    if tm is not None:
        max_tm = min(max_tm, _round_up(max(tm, 8), 8))
    tm_cands = [t for t in (2048, 1024, 512, 256, 128, 64, 32, 16, 8) if t <= max_tm]
    if not tm_cands:
        tm_cands = [8]

    # ---- Hidden tile: prefer th == H (weights VMEM-resident, DMA'd exactly once);
    #      otherwise stream the hidden dim in 256/128-aligned chunks.
    tm_sel = th_sel = None
    for t in tm_cands:
        if vmem_needed(t, H) <= vmem_budget:
            tm_sel, th_sel = t, H
            break
    if tm_sel is None:
        th_opts = [H]
        for align in (256, 128):
            if H % align == 0:
                th_opts = [d for d in range(align, H + 1, align) if H % d == 0]
                break
        done = False
        for t in tm_cands:
            for d in sorted(th_opts, reverse=True):
                if vmem_needed(t, d) <= vmem_budget:
                    tm_sel, th_sel = t, d
                    done = True
                    break
            if done:
                break
        if not done:  # last resort: smallest tiles, let Mosaic try anyway
            tm_sel, th_sel = tm_cands[-1], min(th_opts)

    n_row = pl.cdiv(M, tm_sel)
    grid = (n_row, H // th_sel)

    vmem_limit = int(
        min(vmem_cap * 9 // 10,
            max(vmem_needed(tm_sel, th_sel) * 3 // 2, 32 * 1024 * 1024))
    )

    # Weights are re-streamed per row tile only when the hidden axis is chunked.
    weight_bytes = (E * H + H * E) * cbytes + (H + E) * 4
    weight_stream = weight_bytes if th_sel == H else n_row * weight_bytes
    cost = pl.CostEstimate(
        flops=4 * M * E * H,
        transcendentals=0,
        bytes_accessed=M * E * cbytes + weight_stream + M * E * out_bytes,
    )

    out2d = pl.pallas_call(
        ffn_kernel,
        out_shape=jax.ShapeDtypeStruct((M, E), out_dtype),
        grid_spec=pltpu.PrefetchScalarGridSpec(
            num_scalar_prefetch=0,
            grid=grid,
            in_specs=[
                pl.BlockSpec((tm_sel, E), lambda i, h: (i, 0)),   # x rows (resident over h)
                pl.BlockSpec((E, th_sel), lambda i, h: (0, h)),   # W1 column chunk
                pl.BlockSpec((1, th_sel), lambda i, h: (0, h)),   # b1 chunk (f32)
                pl.BlockSpec((th_sel, E), lambda i, h: (h, 0)),   # W2 row chunk
                pl.BlockSpec((1, E), lambda i, h: (0, 0)),        # b2 (resident, f32)
            ],
            out_specs=pl.BlockSpec((tm_sel, E), lambda i, h: (i, 0)),
            scratch_shapes=[pltpu.VMEM((tm_sel, E), jnp.float32)],  # f32 accumulator
        ),
        compiler_params=pltpu.CompilerParams(
            dimension_semantics=("parallel", "arbitrary"),
            vmem_limit_bytes=vmem_limit,
        ),
        cost_estimate=cost,
    )(x2d, w1c, b1_2d, w2c, b2_2d)

    return out2d.reshape(B, S, E)


if __name__ == "__main__":
    # Small shapes consistent with the module: n_embd=32 -> hidden=128.
    B, S, E = 2, 8, 32
    H = 4 * E

    key = jax.random.PRNGKey(0)
    kx, k1, k2, k3, k4 = jax.random.split(key, 5)

    x = jax.random.normal(kx, (B, S, E), dtype=jnp.float32)
    # Deterministic parameter init (roughly matching nn.Linear's uniform scale).
    w1 = jax.random.uniform(k1, (E, H), minval=-1.0, maxval=1.0, dtype=jnp.float32) / jnp.sqrt(E)
    b1 = jax.random.uniform(k2, (H,), minval=-1.0, maxval=1.0, dtype=jnp.float32) / jnp.sqrt(E)
    w2 = jax.random.uniform(k3, (H, E), minval=-1.0, maxval=1.0, dtype=jnp.float32) / jnp.sqrt(H)
    b2 = jax.random.uniform(k4, (E,), minval=-1.0, maxval=1.0, dtype=jnp.float32) / jnp.sqrt(H)

    # Reference (same semantics as the PyTorch module in eval mode), highest precision.
    x2 = x.reshape(-1, E)
    hidden = jnp.maximum(
        jnp.dot(x2, w1, precision=jax.lax.Precision.HIGHEST) + b1, 0.0
    )
    ref = (jnp.dot(hidden, w2, precision=jax.lax.Precision.HIGHEST) + b2).reshape(B, S, E)

    # 1) f32 MXU path: tight check.
    out_f32 = jax.block_until_ready(
        feed_forward(x, w1, b1, w2, b2, mxu_dtype=jnp.float32)
    )
    assert out_f32.shape == (B, S, E)
    assert jnp.allclose(out_f32, ref, atol=1e-3, rtol=1e-3), float(
        jnp.max(jnp.abs(out_f32 - ref))
    )

    # 2) bf16 operands (default perf path): relaxed tolerance for bf16 rounding.
    out_bf16 = jax.block_until_ready(feed_forward(x, w1, b1, w2, b2))
    assert out_bf16.shape == (B, S, E)
    assert jnp.allclose(out_bf16, ref, atol=5e-2, rtol=5e-2), float(
        jnp.max(jnp.abs(out_bf16 - ref))
    )

    print("KERNEL_OK")
</pallas_src>

<mosaic_0001>
module attributes {stable_mosaic.version = 11 : i64} {
  func.func @ffn_kernel(%arg0: i32, %arg1: i32, %arg2: memref<8x32xf32, #tpu.memory_space<vmem>>, %arg3: memref<32x128xf32, #tpu.memory_space<vmem>>, %arg4: memref<1x128xf32, #tpu.memory_space<vmem>>, %arg5: memref<128x32xf32, #tpu.memory_space<vmem>>, %arg6: memref<1x32xf32, #tpu.memory_space<vmem>>, %arg7: memref<8x32xf32, #tpu.memory_space<vmem>>, %arg8: memref<8x32xf32, #tpu.memory_space<vmem>>) attributes {dimension_semantics = [#tpu.dimension_semantics<parallel>, #tpu.dimension_semantics<arbitrary>], iteration_bounds = array<i64: 2, 1>, scalar_prefetch = 0 : i64, scratch_operands = 1 : i64, tpu.core_type = #tpu.core_type<tc>, window_params = [{transform_indices = @transform_0, window_bounds = array<i64: 8, 32>}, {transform_indices = @transform_1, window_bounds = array<i64: 32, 128>}, {transform_indices = @transform_2, window_bounds = array<i64: 1, 128>}, {transform_indices = @transform_3, window_bounds = array<i64: 128, 32>}, {pipeline_mode = #tpu.pipeline_mode<synchronous>, transform_indices = @transform_4, window_bounds = array<i64: 1, 32>}, {transform_indices = @transform_5, window_bounds = array<i64: 8, 32>}]} {
    %c0_i32 = arith.constant 0 : i32
    %0 = arith.cmpi eq, %arg1, %c0_i32 : i32
    %1 = arith.extui %0 : i1 to i32
    %c0_i32_0 = arith.constant 0 : i32
    %2 = arith.cmpi ne, %1, %c0_i32_0 : i32
    scf.if %2 {
      %c0_16 = arith.constant 0 : index
      %c0_17 = arith.constant 0 : index
      %19 = vector.load %arg6[%c0_16, %c0_17] : memref<1x32xf32, #tpu.memory_space<vmem>>, vector<1x32xf32>
      %20 = vector.shape_cast %19 : vector<1x32xf32> to vector<1x32xf32>
      %21 = vector.broadcast %20 : vector<1x32xf32> to vector<8x32xf32>
      %c0_18 = arith.constant 0 : index
      %c0_19 = arith.constant 0 : index
      %22 = vector.load %arg8[%c0_18, %c0_19] : memref<8x32xf32, #tpu.memory_space<vmem>>, vector<8x32xf32>
      tpu.vector_store %arg8[%c0_18, %c0_19], %21 {strides = array<i32>} : memref<8x32xf32, #tpu.memory_space<vmem>>, vector<8x32xf32>,
    } else {
    }
    %c0 = arith.constant 0 : index
    %c0_1 = arith.constant 0 : index
    %3 = vector.load %arg2[%c0, %c0_1] : memref<8x32xf32, #tpu.memory_space<vmem>>, vector<8x32xf32>
    %c0_2 = arith.constant 0 : index
    %c0_3 = arith.constant 0 : index
    %4 = vector.load %arg3[%c0_2, %c0_3] : memref<32x128xf32, #tpu.memory_space<vmem>>, vector<32x128xf32>
    %cst = arith.constant dense<0.000000e+00> : vector<8x128xf32>
    %5 = tpu.matmul %3, %4, %cst {dimension_numbers = #tpu.dot_dimension_numbers<[1], [0], [0], [1], [0, 0, 1, 1], [], []>} : vector<8x32xf32>, vector<32x128xf32>, vector<8x128xf32> -> vector<8x128xf32>
    %c0_4 = arith.constant 0 : index
    %c0_5 = arith.constant 0 : index
    %6 = vector.load %arg4[%c0_4, %c0_5] : memref<1x128xf32, #tpu.memory_space<vmem>>, vector<1x128xf32>
    %7 = vector.broadcast %6 : vector<1x128xf32> to vector<8x128xf32>
    %8 = arith.addf %5, %7 : vector<8x128xf32>
    %cst_6 = arith.constant 0.000000e+00 : f32
    %9 = vector.broadcast %cst_6 : f32 to vector<8x128xf32>
    %10 = arith.maximumf %8, %9 : vector<8x128xf32>
    %c0_7 = arith.constant 0 : index
    %c0_8 = arith.constant 0 : index
    %11 = vector.load %arg8[%c0_7, %c0_8] : memref<8x32xf32, #tpu.memory_space<vmem>>, vector<8x32xf32>
    %c0_9 = arith.constant 0 : index
    %c0_10 = arith.constant 0 : index
    %12 = vector.load %arg5[%c0_9, %c0_10] : memref<128x32xf32, #tpu.memory_space<vmem>>, vector<128x32xf32>
    %cst_11 = arith.constant dense<0.000000e+00> : vector<8x32xf32>
    %13 = tpu.matmul %10, %12, %cst_11 {dimension_numbers = #tpu.dot_dimension_numbers<[1], [0], [0], [1], [0, 0, 1, 1], [], []>} : vector<8x128xf32>, vector<128x32xf32>, vector<8x32xf32> -> vector<8x32xf32>
    %14 = arith.addf %11, %13 : vector<8x32xf32>
    %c0_12 = arith.constant 0 : index
    %c0_13 = arith.constant 0 : index
    %15 = vector.load %arg8[%c0_12, %c0_13] : memref<8x32xf32, #tpu.memory_space<vmem>>, vector<8x32xf32>
    tpu.vector_store %arg8[%c0_12, %c0_13], %14 {strides = array<i32>} : memref<8x32xf32, #tpu.memory_space<vmem>>, vector<8x32xf32>,
    %c0_i32_14 = arith.constant 0 : i32
    %16 = arith.cmpi eq, %arg1, %c0_i32_14 : i32
    %17 = arith.extui %16 : i1 to i32
    %c0_i32_15 = arith.constant 0 : i32
    %18 = arith.cmpi ne, %17, %c0_i32_15 : i32
    scf.if %18 {
      %c0_16 = arith.constant 0 : index
      %c0_17 = arith.constant 0 : index
      %19 = vector.load %arg8[%c0_16, %c0_17] : memref<8x32xf32, #tpu.memory_space<vmem>>, vector<8x32xf32>
      %c0_18 = arith.constant 0 : index
      %c0_19 = arith.constant 0 : index
      %20 = vector.load %arg7[%c0_18, %c0_19] : memref<8x32xf32, #tpu.memory_space<vmem>>, vector<8x32xf32>
      tpu.vector_store %arg7[%c0_18, %c0_19], %19 {strides = array<i32>} : memref<8x32xf32, #tpu.memory_space<vmem>>, vector<8x32xf32>,
    } else {
    }
    return
  }
  func.func @transform_0(%arg0: i32, %arg1: i32) -> (i32, i32) {
    %c0_i32 = arith.constant 0 : i32
    %c0_i32_0 = arith.constant 0 : i32
    return %arg0, %c0_i32 : i32, i32
  }
  func.func @transform_1(%arg0: i32, %arg1: i32) -> (i32, i32) {
    %c0_i32 = arith.constant 0 : i32
    %c0_i32_0 = arith.constant 0 : i32
    return %c0_i32, %arg1 : i32, i32
  }
  func.func @transform_2(%arg0: i32, %arg1: i32) -> (i32, i32) {
    %c0_i32 = arith.constant 0 : i32
    %c0_i32_0 = arith.constant 0 : i32
    return %c0_i32, %arg1 : i32, i32
  }
  func.func @transform_3(%arg0: i32, %arg1: i32) -> (i32, i32) {
    %c0_i32 = arith.constant 0 : i32
    %c0_i32_0 = arith.constant 0 : i32
    return %arg1, %c0_i32 : i32, i32
  }
  func.func @transform_4(%arg0: i32, %arg1: i32) -> (i32, i32) {
    %c0_i32 = arith.constant 0 : i32
    %c0_i32_0 = arith.constant 0 : i32
    %c0_i32_1 = arith.constant 0 : i32
    return %c0_i32, %c0_i32_0 : i32, i32
  }
  func.func @transform_5(%arg0: i32, %arg1: i32) -> (i32, i32) {
    %c0_i32 = arith.constant 0 : i32
    %c0_i32_0 = arith.constant 0 : i32
    return %arg0, %c0_i32 : i32, i32
  }
}

</mosaic_0001>

<bundles_post_ra>
// kernel: tpu_custom_call.1
= control target key start
LH: loop header
LB: loop body
LE: loop exit
PB: predicated region body
PF: predicated region fallthrough
CT: control target
= control target key end

     0   :  { %10 = vsyncpa [#allocation4], 0  ;;  %s1054_s0 = inlined_call_operand.vmem [shape: f32[16,32], index: 0, kind: input, shape index: {}]   ;;  %s1055_s1 = inlined_call_operand.vmem [shape: f32[32,128], index: 1, kind: input, shape index: {}]   ;;  %s1056_s2 = inlined_call_operand.vmem [shape: f32[1,128], index: 2, kind: input, shape index: {}]   ;;  %s1057_s3 = inlined_call_operand.vmem [shape: f32[128,32], index: 3, kind: input, shape index: {}]   ;;  %s1058_s4 = inlined_call_operand.vmem [shape: f32[1,32], index: 4, kind: input, shape index: {}]   ;;  %s1059_s5 = inlined_call_operand.hbm [shape: f32[16,32], index: 5, kind: output, shape index: {}]  }
   0x1   :  { %12 = vsyncpa [#allocation4 + $0x1], 0  ;;  %s855_s18 = smov 0   ;;  %s857_s19 = smov 0  }
   0x2   :  { %s859_s20 = smov 0   ;;  %s861_s21 = smov 0  }
   0x3   :  { %s863_s22 = smov 0   ;;  %s865_s23 = smov 0  }
   0x4 LB: > { %s602_s24 = sadd.s32 4294967295, %s820_s23   ;;  %s603_s25 = sadd.s32 4294967294, %s820_s23   ;;  %s820_s23 = sphi %s865_s23, %s18_s23   ;;  %s816_s22 = sphi %s863_s22, %s1066_s22   ;;  %s812_s21 = sphi %s861_s21, %s1065_s21   ;;  %s808_s20 = sphi %s859_s20, %s1064_s20   ;;  %s804_s19 = sphi %s857_s19, %s1063_s19   ;;  %s800_s18 = sphi %s855_s18, %s1062_s18  }
   0x5   : > { %s30_s26 = sadd.s32 1, %s816_s22  ;;  %s162_s27 = sadd.s32 1, %s808_s20 }
   0x6   : > { %p32_p0 = scmp.ge.s32.totalorder %s30_s26, 2  ;;  %p172_p1 = scmp.ne.s32.totalorder %s808_s20, %s804_s19 }
   0x7   : > { %p173_p2 = scmp.eq.s32.totalorder %s602_s24, 1  ;;  %p178_p3 = scmp.ne.s32.totalorder %s804_s19, %s800_s18 }
   0x8   : > { %s1068_s26 = smov (%p32_p0, %s30_s26), 0  ;;  %p179_p5 = scmp.eq.s32.totalorder %s603_s25, 1 }
   0x9   : > { %p895_p4 = por %p173_p2, %p172_p1  ;;  %s159_s29 = ssub.s32 %s816_s22, %s1068_s26 }
   0xa   : > { %p609_p6 = scmp.ge.s32.totalorder %s820_s23, 1  ;;  %p160_p7 = scmp.eq.s32.totalorder %s159_s29, 0 }
   0xb   : > { %p902_p8 = por %p179_p5, %p178_p3  ;;  %p229_p9 = scmp.lt.s32.totalorder %s820_s23, 3 }
   0xc   : > { %s908_s6 = scalar_select %p160_p7, %s808_s20, %s162_s27  }
   0xd   : > { %p230_p10 = pnand %p609_p6, %p229_p9 }
   0xe   : > { %p268_p11 = scmp.lt.s32.totalorder (!%p230_p10), %s812_s21, 1  ;;  %s265_s11 = sand.u32 (!%p230_p10), 1, %s804_s19  }
   0xf   : > { %233 = sbr.rel (%p230_p10) target bundleno = 442 (0x1ba), region = 40  ;;  %s616_s13 = sshll.u32 (!%p230_p10), %s812_s21, 7 }
  0x10   : > { %s1013_s24 = scalar_lea.hbm (!%p230_p10), %s1059_s5, %s616_s13  ;;  %s480_s25 = scalar_lea.sflag (!%p230_p10), [#allocation4], %s265_s11 }
  0x11   : > { %s824_s29 = smov (!%p230_p10), [#allocation3]  }
  0x12   : > { %s748_s7 = sshll.u32 (!%p230_p10), %s824_s29, 4  ;;  %s749_s7 = int_to_ptr.vmem [resolvable:$false] %s748_s7 }
  0x14   : > { %v302_v0 = vld [vmem:[%s1055_s1 + $0x18] sm:$0xff]  ;;  %v822_v1 = vmov 0.0   ;;  %v301_v2 = vld [vmem:[%s1055_s1 + $0x10] sm:$0xff]  ;;  %vm823_vm0 = vmmov 0   ;;  %v612_v3 = vld [vmem:[%s1058_s4] ss:$0 sm:$0xff] }
  0x15   : > { %641 = vmatprep.subr.mxu0 %v822_v1  ;;  %649 = vmatprep.mubr.msk.f32.mxu0 %vm823_vm0, %v822_v1  ;;  %vm296_vm1 = vcmask 261120   ;;  %v401_v4 = vld [vmem:[%s1057_s3 + $0x78] sm:$0xff]  ;;  %s269_s15 = scalar_select %p268_p11, %s812_s21, 1  ;;  %v400_v5 = vld [vmem:[%s1057_s3 + $0x70] sm:$0xff]  ;;  %v300_v6 = vld [vmem:[%s1055_s1 + $0x8] sm:$0xff] }
  0x16   : > { %642 = vmatpush3.msra.mxu0 %v302_v0  ;;  %297 = vst.msk [vmem:[#allocation2] sm:$0xff] %vm296_vm1, %v612_v3  ;;  %652 = vmatprep.subr.mxu1 %v822_v1  ;;  %v399_v7 = vld [vmem:[%s1057_s3 + $0x68] sm:$0xff]  ;;  %v299_v8 = vld [vmem:[%s1055_s1] sm:$0xff]  ;;  %v397_v11 = vld [vmem:[%s1057_s3 + $0x58] sm:$0xff]  ;;  %s750_s21 = scalar_lea.vmem %s749_s7, 256 }
  0x17   : > { %643 = vmatprep.subr.mxu0 %v822_v1  ;;  %653 = vmatpush3.msra.mxu1 %v401_v4  ;;  %s611_s27 = sshll.u32 %s269_s15, 3  ;;  %v398_v10 = vld [vmem:[%s1057_s3 + $0x60] sm:$0xff]  ;;  %v396_v12 = vld [vmem:[%s1057_s3 + $0x50] sm:$0xff]  ;;  %v395_v13 = vld [vmem:[%s1057_s3 + $0x48] sm:$0xff] }
  0x18   : > { %644 = vmatpush3.msra.mxu0 %v301_v2  ;;  %654 = vmatprep.subr.mxu1 %v822_v1  ;;  %s271_s12 = scalar_lea.vmem %s1054_s0, %s611_s27  ;;  %v394_v14 = vld [vmem:[%s1057_s3 + $0x40] sm:$0xff]  ;;  %v393_v15 = vld [vmem:[%s1057_s3 + $0x38] sm:$0xff]  ;;  %v392_v16 = vld [vmem:[%s1057_s3 + $0x30] sm:$0xff] }
  0x19   : > { %645 = vmatprep.subr.mxu0 %v822_v1  ;;  %655 = vmatpush3.msra.mxu1 %v400_v5  ;;  %v298_v9 = vld [vmem:[%s271_s12] sm:$0xff]  ;;  %v391_v17 = vld [vmem:[%s1057_s3 + $0x28] sm:$0xff]  ;;  %v389_v19 = vld [vmem:[%s1057_s3 + $0x18] sm:$0xff]  ;;  %s610_s12 = sshll.u32 %s265_s11, 3 }
  0x1a   : > { %646 = vmatpush3.msra.mxu0 %v300_v6  ;;  %656 = vmatprep.subr.mxu1 %v822_v1  ;;  %v390_v18 = vld [vmem:[%s1057_s3 + $0x20] sm:$0xff]  ;;  %v388_v20 = vld [vmem:[%s1057_s3 + $0x10] sm:$0xff]  ;;  %v387_v21 = vld [vmem:[%s1057_s3 + $0x8] sm:$0xff]  ;;  %s267_s14 = scalar_lea.vmem [#allocation3], %s610_s12 }
  0x1b   : > { %647 = vmatprep.subr.mxu0 %v822_v1  ;;  %657 = vmatpush3.msra.mxu1 %v399_v7  ;;  %v386_v22 = vld [vmem:[%s1057_s3] sm:$0xff]  ;;  %s493_s15 = sshll.u32 %s267_s14, 4  ;;  %s494_s15 = int_to_ptr.vmem [resolvable:$true] %s493_s15 }
  0x1c   : > { %648 = vmatpush3.msra.mxu0 %v299_v8  ;;  %658 = vmatprep.subr.mxu1 %v822_v1  ;;  %v613_v23 = vld [vmem:[%s1056_s2] ss:$0 sm:$0xff]  ;;  %s744_s27 = scalar_lea.vmem %s494_s15, 128  ;;  %p751_p1 = scmp.lt.s32.totalorder %s494_s15, %s749_s7 }
  0x1d   : > { %650 = vmatmul.mubr.msk.f32.vlgmr.msra.gmra.mxu0 %vm296_vm1, %v298_v9  ;;  %659 = vmatpush3.msra.mxu1 %v398_v10  ;;  %v385_v28 = vld [vmem:[#allocation2] sm:$0xff]  ;;  %p745_p12 = scmp.ne.s32.totalorder %s494_s15, %s744_s27  ;;  %p752_p2 = scmp.lt.s32.totalorder %s750_s21, %s744_s27 }
  0x1e   : > { %660 = vmatprep.subr.mxu1 %v822_v1  ;;  %684 = vmatprep.mubr.msk.f32.mxu1 %vm823_vm0, %v822_v1 }
  0x1f   : > { %661 = vmatpush3.msra.mxu1 %v397_v11  ;;  %p746_p13 = pnand %p745_p12, %p895_p4  ;;  %p753_p3 = por %p752_p2, %p751_p1 }
  0x20   : > { %662 = vmatprep.subr.mxu1 %v822_v1 }
  0x21   : > { %663 = vmatpush3.msra.mxu1 %v396_v12  ;;  %p747_p0 = pneg %p746_p13 }
  0x22   : > { %664 = vmatprep.subr.mxu1 %v822_v1 }
  0x23   : > { %665 = vmatpush3.msra.mxu1 %v395_v13  ;;  %p754_p5 = pnand %p753_p3, %p747_p0 }
  0x24   : > { %666 = vmatprep.subr.mxu1 %v822_v1 }
  0x25   : > { %667 = vmatpush3.msra.mxu1 %v394_v14 }
  0x26   : > { %668 = vmatprep.subr.mxu1 %v822_v1 }
  0x27   : > { %669 = vmatpush3.msra.mxu1 %v393_v15 }
  0x28   : > { %670 = vmatprep.subr.mxu1 %v822_v1 }
  0x29   : > { %671 = vmatpush3.msra.mxu1 %v392_v16 }
  0x2a   : > { %672 = vmatprep.subr.mxu1 %v822_v1 }
  0x2b   : > { %673 = vmatpush3.msra.mxu1 %v391_v17 }
  0x2c   : > { %674 = vmatprep.subr.mxu1 %v822_v1 }
  0x2d   : > { %675 = vmatpush3.msra.mxu1 %v390_v18 }
  0x2e   : > { %676 = vmatprep.subr.mxu1 %v822_v1 }
  0x2f   : > { %677 = vmatpush3.msra.mxu1 %v389_v19 }
  0x30   : > { %678 = vmatprep.subr.mxu1 %v822_v1 }
  0x31   : > { %679 = vmatpush3.msra.mxu1 %v388_v20 }
  0x32   : > { %680 = vmatprep.subr.mxu1 %v822_v1 }
  0x33   : > { %681 = vmatpush3.msra.mxu1 %v387_v21 }
  0x34   : > { %682 = vmatprep.subr.mxu1 %v822_v1 }
  0x35   : > { %683 = vmatpush3.msra.mxu1 %v386_v22 }
  0xdd   : > { %v380_v24 = vpop.f32.mrf.mxu0 }
  0xde   : > { %v381_v25 = vadd.f32 %v613_v23, %v380_v24 }
  0xdf   : > { %v651_v26 = vpop.f32.mrf.mxu0 }
  0xe0   : > { %v384_v27 = vmax.f32 %v381_v25, 0.0 }
  0xe2   : > { %685 = vmatmul.mubr.f32.vlgmr.msra.gmra.mxu1 %v384_v27 }
 0x1a2   : > { %v468_v29 = vpop.f32.mrf.mxu1 }
 0x1a3   : > { %v472_v30 = vadd.f32 %v468_v29, %v385_v28 }
 0x1a4   : > { %v686_v31 = vpop.f32.mrf.mxu1 }
 0x1a5   : > { %473 = vst.msk [vmem:[#allocation2] sm:$0xff] %vm296_vm1, %v472_v30 }
 0x1ac   : > { %v477_v32 = vld [vmem:[#allocation2] sm:$0xff] }
 0x1ad   : > { %478 = vst.msk [vmem:[%s267_s14] sm:$0xff] %vm296_vm1, %v477_v32 }
 0x1ae   : > { %757 = shalt.err (!%p754_p5)
}
 0x1af   : > { %s758_s8 = scalar_lea.hbm %s1013_s24, 128  ;;  %s762_s11 = scalar_lea.hbm %s1059_s5, 256 }
 0x1b0   : > { %p759_p6 = scmp.ne.s32.totalorder %s1013_s24, %s758_s8  ;;  %p763_p10 = scmp.lt.s32.totalorder %s1013_s24, %s1059_s5 }
 0x1b1   : > { %p764_p11 = scmp.lt.s32.totalorder %s762_s11, %s758_s8 }
 0x1b2   : > { %p760_p7 = pnand %p759_p6, %p895_p4 }
 0x1b3   : > { %p765_p12 = por %p764_p11, %p763_p10 }
 0x1b4   : > { %p761_p9 = pneg %p760_p7 }
 0x1b6   : > { %p766_p13 = pnand %p765_p12, %p761_p9 }
 0x1b8   : > { %769 = shalt.err (!%p766_p13)
}
 0x1b9   : > { %687 = dma.vmem_to_hbm [thread:$0]  (%p895_p4), %s494_s15, 128, %s1013_s24, %s480_s25  }
 0x1ba PF: > { %p693_p0 = scmp.ge.s32.totalorder %s820_s23, 2  ;;  %s505_s14 = sand.u32 1, %s800_s18  }
 0x1bb   : > { %s506_s16 = scalar_lea.sflag [#allocation4], %s505_s14 }
 0x1bc   : > { %p690_p1 = pnand %p693_p0, %p902_p8 }
 0x1be   : > { %p691_p2 = pneg %p690_p1 }
 0x1c0   : > { %795 = dma.done.wait (%p691_p2), %s506_s16, 128  }
 0x1c1   : > { %797 = vsyncadd (%p691_p2), %s506_s16, 4294967168  ;;  %s18_s23 = sadd.s32 1, %s820_s23   ;;  %s1062_s18 = smov %s804_s19 }
 0x1c2   : > { %p15_p3 = scmp.ge.s32.totalorder %s18_s23, 4   ;;  %s1063_s19 = smov %s808_s20 }
 0x1c3   : > { %s1064_s20 = smov %s908_s6  ;;  %s1065_s21 = smov %s816_s22 }
 0x1c4   : > { %s1066_s22 = smov %s1068_s26  ;;  %17 = sbr.rel (!%p15_p3) target bundleno = 4 (0x4), region = 92 }
 0x1c9   :  { %511 = vsyncpa [#allocation4], 1 }
 0x1ca   :  { %513 = vsyncpa [#allocation4 + $0x1], 1 }

</bundles_post_ra>
